<compile_context>
chip_gen: v7x
topology: tpu7x:2x2x1
jax: 0.10.0
libtpu: 0.0.40
codegen_flags: <defaults>
</compile_context>

<pallas_src>
import jax
import jax.numpy as jnp
from jax.experimental import pallas as pl
from jax.experimental.pallas import tpu as pltpu


def _attn_kernel(q_ref, v_ref, ctx_ref, probs_ref):
    # q_ref:     (Bt, 1, H)   queries for this batch block
    # v_ref:     (Bt, S, H)   values for this batch block (read once, reused twice)
    # ctx_ref:   (Bt, H)      lane-dense 2-D output
    # probs_ref: (Bt, S)      lane-dense 2-D output
    q = q_ref[...]
    v = v_ref[...]

    # scores: contract the H axes directly (batched) -- no explicit transpose of v.
    s = jnp.einsum("bqh,bsh->bqs", q, v,
                   preferred_element_type=jnp.float32)            # (Bt, 1, S)

    # numerically stable softmax over the sequence axis (f32 math throughout)
    m = jnp.max(s, axis=-1, keepdims=True)
    e = jnp.exp(s - m)
    denom = jnp.sum(e, axis=-1, keepdims=True)
    probs = e * pl.reciprocal(denom, approx=True)                 # (Bt, 1, S) f32

    # context = probs @ values (batched), values reused from VMEM
    ctx = jnp.einsum("bqs,bsh->bqh", probs.astype(v.dtype), v,
                     preferred_element_type=jnp.float32)          # (Bt, 1, H)

    probs_ref[...] = probs[:, 0, :].astype(probs_ref.dtype)
    ctx_ref[...] = ctx[:, 0, :].astype(ctx_ref.dtype)


def _choose_batch_tile(B, S, H, itemsize, target_bytes=2 * 1024 * 1024):
    """Pick the batch-block size Bt.

    Big enough that each values tile is ~MiB-scale (kernel is HBM-bandwidth bound;
    tiny tiles are per-step-overhead bound), small enough that double-buffered
    inputs fit comfortably in every generation's default scoped VMEM.
    """
    per_batch = max(1, S * H * itemsize)
    bt = min(B, max(1, target_bytes // per_batch))
    if bt < B:
        # sublane-align (second-minor dim of the 2-D output blocks)
        bt = max(8, (bt // 8) * 8)
        bt = min(bt, B)
        return bt
    # Whole batch fits in one block. If B is large enough, split into two blocks
    # so the parallel grid axis can shard across both v7x TensorCores.
    if B >= 16 and (B // 2) % 8 == 0:
        return B // 2
    return B


def dot_product_attention(query, values):
    """query: [B, 1, H], values: [B, S, H] -> (context [B, H], probs [B, S])."""
    B, q_len, H = query.shape
    assert q_len == 1, "DotProductAttention expects query_len == 1"
    Bv, S, Hv = values.shape
    assert Bv == B and Hv == H

    Bt = _choose_batch_tile(B, S, H, jnp.dtype(values.dtype).itemsize)
    grid = (pl.cdiv(B, Bt),)

    # TODO(synk): for very long encoder sequences (S*H*itemsize per batch element far
    # beyond a few MiB), tile S with an online-softmax accumulator instead of the
    # full (Bt, S, H) slab.
    ctx, probs = pl.pallas_call(
        _attn_kernel,
        out_shape=(
            jax.ShapeDtypeStruct((B, H), query.dtype),
            jax.ShapeDtypeStruct((B, S), query.dtype),
        ),
        grid_spec=pltpu.PrefetchScalarGridSpec(
            num_scalar_prefetch=0,
            grid=grid,
            in_specs=[
                pl.BlockSpec((Bt, 1, H), lambda b: (b, 0, 0)),
                pl.BlockSpec((Bt, S, H), lambda b: (b, 0, 0)),
            ],
            out_specs=[
                pl.BlockSpec((Bt, H), lambda b: (b, 0)),
                pl.BlockSpec((Bt, S), lambda b: (b, 0)),
            ],
        ),
        compiler_params=pltpu.CompilerParams(
            dimension_semantics=("parallel",)),
    )(query, values)
    return ctx, probs


def _reference(query, values):
    scores = jnp.einsum("bqh,bsh->bqs", query, values)[:, 0, :]
    probs = jax.nn.softmax(scores, axis=1)
    ctx = jnp.einsum("bs,bsh->bh", probs, values)
    return ctx, probs


def _check(B, S, H, key):
    kq, kv = jax.random.split(key)
    query = jax.random.normal(kq, (B, 1, H), dtype=jnp.float32)
    values = jax.random.normal(kv, (B, S, H), dtype=jnp.float32)

    ctx, probs = dot_product_attention(query, values)
    jax.block_until_ready((ctx, probs))

    ctx_ref, probs_ref = _reference(query, values)
    assert ctx.shape == (B, H) and probs.shape == (B, S)
    # approx=True reciprocal in the softmax denominator -> slightly looser tolerance
    assert jnp.allclose(ctx, ctx_ref, atol=5e-3, rtol=5e-3)
    assert jnp.allclose(probs, probs_ref, atol=5e-3, rtol=5e-3)


if __name__ == "__main__":
    key = jax.random.PRNGKey(0)
    k0, k1 = jax.random.split(key)

    # Small shape implied by the module (batch=2, query_len=1, seq=8, hidden=32).
    _check(B=2, S=8, H=32, key=k0)
    # Larger batch to exercise the multi-block (batch-tiled, 2-block parallel) path.
    _check(B=16, S=24, H=40, key=k1)

    print("KERNEL_OK")
</pallas_src>

<mosaic_0001>
module attributes {stable_mosaic.version = 11 : i64} {
  func.func @_attn_kernel(%arg0: i32, %arg1: memref<2x1x32xf32, #tpu.memory_space<vmem>>, %arg2: memref<2x8x32xf32, #tpu.memory_space<vmem>>, %arg3: memref<2x32xf32, #tpu.memory_space<vmem>>, %arg4: memref<2x8xf32, #tpu.memory_space<vmem>>) attributes {dimension_semantics = [#tpu.dimension_semantics<parallel>], iteration_bounds = array<i64: 1>, scalar_prefetch = 0 : i64, scratch_operands = 0 : i64, tpu.core_type = #tpu.core_type<tc>, window_params = [{transform_indices = @transform_0, window_bounds = array<i64: 2, 1, 32>}, {transform_indices = @transform_1, window_bounds = array<i64: 2, 8, 32>}, {transform_indices = @transform_2, window_bounds = array<i64: 2, 32>}, {transform_indices = @transform_3, window_bounds = array<i64: 2, 8>}]} {
    %c0 = arith.constant 0 : index
    %c0_0 = arith.constant 0 : index
    %c0_1 = arith.constant 0 : index
    %0 = vector.load %arg1[%c0, %c0_0, %c0_1] : memref<2x1x32xf32, #tpu.memory_space<vmem>>, vector<2x1x32xf32>
    %c0_2 = arith.constant 0 : index
    %c0_3 = arith.constant 0 : index
    %c0_4 = arith.constant 0 : index
    %1 = vector.load %arg2[%c0_2, %c0_3, %c0_4] : memref<2x8x32xf32, #tpu.memory_space<vmem>>, vector<2x8x32xf32>
    "tpu.trace_start"() <{level = 10 : i32, message = "bqh,bsh->bqs"}> : () -> ()
    %cst = arith.constant dense<0.000000e+00> : vector<2x1x8xf32>
    %2 = tpu.matmul %0, %1, %cst {dimension_numbers = #tpu.dot_dimension_numbers<[2], [2], [1], [1], [0, 0, 0, 1, 1, 1], [0], [0]>} : vector<2x1x32xf32>, vector<2x8x32xf32>, vector<2x1x8xf32> -> vector<2x1x8xf32>
    "tpu.trace_stop"() : () -> ()
    %cst_5 = arith.constant dense<0xFF800000> : vector<2x1xf32>
    %3 = vector.multi_reduction <maximumf>, %2, %cst_5 [2] : vector<2x1x8xf32> to vector<2x1xf32>
    %4 = vector.shape_cast %3 : vector<2x1xf32> to vector<2x1x1xf32>
    %5 = vector.broadcast %4 : vector<2x1x1xf32> to vector<2x1x8xf32>
    %6 = arith.subf %2, %5 : vector<2x1x8xf32>
    %7 = math.exp %6 : vector<2x1x8xf32>
    %cst_6 = arith.constant dense<0.000000e+00> : vector<2x1xf32>
    %8 = vector.multi_reduction <add>, %7, %cst_6 [2] : vector<2x1x8xf32> to vector<2x1xf32>
    %9 = vector.shape_cast %8 : vector<2x1xf32> to vector<2x1x1xf32>
    %10 = tpu.reciprocal %9 {approx = true} : vector<2x1x1xf32> -> vector<2x1x1xf32>
    %11 = vector.broadcast %10 : vector<2x1x1xf32> to vector<2x1x8xf32>
    %12 = arith.mulf %7, %11 : vector<2x1x8xf32>
    "tpu.trace_start"() <{level = 10 : i32, message = "bqs,bsh->bqh"}> : () -> ()
    %cst_7 = arith.constant dense<0.000000e+00> : vector<2x1x32xf32>
    %13 = tpu.matmul %12, %1, %cst_7 {dimension_numbers = #tpu.dot_dimension_numbers<[2], [1], [1], [2], [0, 0, 0, 1, 1, 2], [0], [0]>} : vector<2x1x8xf32>, vector<2x8x32xf32>, vector<2x1x32xf32> -> vector<2x1x32xf32>
    "tpu.trace_stop"() : () -> ()
    %14 = vector.shape_cast %12 : vector<2x1x8xf32> to vector<2x8xf32>
    %c0_8 = arith.constant 0 : index
    %c0_9 = arith.constant 0 : index
    %15 = vector.load %arg4[%c0_8, %c0_9] : memref<2x8xf32, #tpu.memory_space<vmem>>, vector<2x8xf32>
    tpu.vector_store %arg4[%c0_8, %c0_9], %14 {strides = array<i32>} : memref<2x8xf32, #tpu.memory_space<vmem>>, vector<2x8xf32>,
    %16 = vector.shape_cast %13 : vector<2x1x32xf32> to vector<2x32xf32>
    %c0_10 = arith.constant 0 : index
    %c0_11 = arith.constant 0 : index
    %17 = vector.load %arg3[%c0_10, %c0_11] : memref<2x32xf32, #tpu.memory_space<vmem>>, vector<2x32xf32>
    tpu.vector_store %arg3[%c0_10, %c0_11], %16 {strides = array<i32>} : memref<2x32xf32, #tpu.memory_space<vmem>>, vector<2x32xf32>,
    return
  }
  func.func @transform_0(%arg0: i32) -> (i32, i32, i32) {
    %c0_i32 = arith.constant 0 : i32
    %c0_i32_0 = arith.constant 0 : i32
    %c0_i32_1 = arith.constant 0 : i32
    return %arg0, %c0_i32, %c0_i32_0 : i32, i32, i32
  }
  func.func @transform_1(%arg0: i32) -> (i32, i32, i32) {
    %c0_i32 = arith.constant 0 : i32
    %c0_i32_0 = arith.constant 0 : i32
    %c0_i32_1 = arith.constant 0 : i32
    return %arg0, %c0_i32, %c0_i32_0 : i32, i32, i32
  }
  func.func @transform_2(%arg0: i32) -> (i32, i32) {
    %c0_i32 = arith.constant 0 : i32
    %c0_i32_0 = arith.constant 0 : i32
    return %arg0, %c0_i32 : i32, i32
  }
  func.func @transform_3(%arg0: i32) -> (i32, i32) {
    %c0_i32 = arith.constant 0 : i32
    %c0_i32_0 = arith.constant 0 : i32
    return %arg0, %c0_i32 : i32, i32
  }
}

</mosaic_0001>

<bundles_post_ra>
// kernel: tpu_custom_call.1
= control target key start
LH: loop header
LB: loop body
LE: loop exit
PB: predicated region body
PF: predicated region fallthrough
CT: control target
= control target key end

     0   :  { %9 = vsyncpa [#allocation3], 0  ;;  %s649_s0 = inlined_call_operand.hbm [shape: f32[2,1,32], index: 0, kind: input, shape index: {}]   ;;  %s650_s1 = inlined_call_operand.hbm [shape: f32[2,8,32], index: 1, kind: input, shape index: {}]   ;;  %s651_s2 = inlined_call_operand.hbm [shape: f32[2,32], index: 2, kind: output, shape index: {0}]   ;;  %s652_s3 = inlined_call_operand.hbm [shape: f32[2,8], index: 3, kind: output, shape index: {1}]  }
   0x1   :  { %10 = vsyncpa [#allocation6], 0 }
   0x2   :  { %11 = vsyncpa [#allocation4], 0 }
   0x3   :  { %12 = vsyncpa [#allocation9], 0  ;;  %s561_s12 = smov [#allocation2]   ;;  %s465_s16 = scalar_lea.hbm %s649_s0, 32 }
   0x4   :  { %s18_s13 = sshll.u32 %s561_s12, 4  ;;  %p466_p0 = scmp.ne.s32.totalorder %s649_s0, %s465_s16  ;;  %s19_s13 = int_to_ptr.vmem [resolvable:$true] %s18_s13 }
   0x5   :  { %p469_p1 = scmp.lt.u32.totalorder %s465_s16, %s649_s0 }
   0x7   :  { %p471_p2 = pnand %p469_p1, %p466_p0 }
   0x9   :  { %474 = shalt.err (!%p471_p2)
}
   0xa   :  { %s475_s21 = scalar_lea.vmem %s19_s13, 32  ;;  %p480_p4 = scmp.lt.s32.totalorder %s19_s13, %s19_s13 }
   0xb   :  { %p476_p3 = scmp.ne.s32.totalorder %s19_s13, %s475_s21  ;;  %p481_p5 = scmp.lt.s32.totalorder %s475_s21, %s475_s21 }
   0xd   :  { %p482_p6 = por %p481_p5, %p480_p4 }
   0xf   :  { %p483_p7 = pnand %p482_p6, %p476_p3 }
  0x11   :  { %486 = shalt.err (!%p483_p7)
}
  0x12   :  { %s562_s22 = smov 16   ;;  %s563_s23 = smov 1  }
  0x13   :  { %24 = dma.hbm_to_vmem [thread:$0]  %s649_s0, 32, %s19_s13, [#allocation3], %s562_s22, %s562_s22, %s563_s23  }
  0x14   :  { %s564_s26 = smov [#allocation5]   ;;  %s487_s30 = scalar_lea.hbm %s650_s1, 256 }
  0x15   :  { %s30_s27 = sshll.u32 %s564_s26, 4  ;;  %p488_p8 = scmp.ne.s32.totalorder %s650_s1, %s487_s30  ;;  %s31_s27 = int_to_ptr.vmem [resolvable:$true] %s30_s27 }
  0x16   :  { %p491_p9 = scmp.lt.u32.totalorder %s487_s30, %s650_s1 }
  0x18   :  { %p493_p10 = pnand %p491_p9, %p488_p8 }
  0x1a   :  { %496 = shalt.err (!%p493_p10)
}
  0x1b   :  { %s497_s8 = scalar_lea.vmem %s31_s27, 256  ;;  %p502_p12 = scmp.lt.s32.totalorder %s31_s27, %s31_s27 }
  0x1c   :  { %p498_p11 = scmp.ne.s32.totalorder %s31_s27, %s497_s8  ;;  %p503_p13 = scmp.lt.s32.totalorder %s497_s8, %s497_s8 }
  0x1e   :  { %p504_p0 = por %p503_p13, %p502_p12 }
  0x20   :  { %p505_p1 = pnand %p504_p0, %p498_p11 }
  0x22   :  { %508 = shalt.err (!%p505_p1)
}
  0x23   :  { %s565_s0 = smov 128   ;;  %s566_s9 = smov 8  }
  0x24   :  { %36 = dma.hbm_to_vmem [thread:$0]  %s650_s1, 256, %s31_s27, [#allocation6], %s565_s0, %s565_s0, %s566_s9  }
  0x25   :  { %553 = dma.done.wait [#allocation3], 32  }
  0x26   :  { %554 = vsyncadd [#allocation3], 4294967264 }
  0x27   :  { %555 = dma.done.wait [#allocation6], 256  }
  0x28   :  { %556 = vsyncadd [#allocation6], 4294967040  ;;  %v567_v0 = vmov 0.0   ;;  %vm568_vm0 = vmmov 0   ;;  %vm47_vm1 = vcmask 261120   ;;  %v46_v1 = vld [vmem:[#allocation5 + $0x8] sm:$0xff] }
  0x29   :  { %432 = vmatprep.subr.mxu1 %v567_v0  ;;  %427 = vmatprep.subr.mxu0 %v567_v0  ;;  %v45_v2 = vld [vmem:[#allocation5] sm:$0xff]  ;;  %v44_v3 = vld [vmem:[#allocation2 + $0x1] sm:$0x1]  ;;  %v43_v4 = vld [vmem:[#allocation2] sm:$0x1]  ;;  %vm200_vm2 = vcmask 57344  }
  0x2a   :  { %434 = vmatprep.mubr.msk.f32.mxu1 %vm568_vm0, %v567_v0  ;;  %429 = vmatprep.mubr.msk.f32.mxu0 %vm568_vm0, %v567_v0  ;;  %vm223_vm3 = vcmask 64512   ;;  %vm371_vm4 = vcmask 1041409   ;;  %vm374_vm5 = vcmask 58368   ;;  %s569_s1 = smov [#allocation8]  }
  0x2b   :  { %433 = vmatpush3.xpose.msk.msra.mxu1 %vm47_vm1, %v46_v1  ;;  %428 = vmatpush3.xpose.msk.msra.mxu0 %vm47_vm1, %v45_v2  ;;  %s399_s12 = sshll.u32 %s569_s1, 4  ;;  %s400_s12 = int_to_ptr.vmem [resolvable:$true] %s399_s12 }
  0x2c   :  { %442 = vmatprep.subr.mxu1 %v567_v0  ;;  %437 = vmatprep.subr.mxu0 %v567_v0  ;;  %s509_s13 = scalar_lea.vmem %s400_s12, 32  ;;  %p514_p3 = scmp.lt.s32.totalorder %s400_s12, %s400_s12 }
  0x2d   :  { %p510_p2 = scmp.ne.s32.totalorder %s400_s12, %s509_s13  ;;  %p515_p4 = scmp.lt.s32.totalorder %s509_s13, %s509_s13 }
  0x2e   :  { %435 = vmatmul.mubr.msk.f32.vlgmr.msra.gmra.mrb[0].mxu1 %vm47_vm1, %v44_v3  ;;  %430 = vmatmul.mubr.msk.f32.vlgmr.msra.gmra.mrb[0].mxu0 %vm47_vm1, %v43_v4 }
  0x2f   :  { %443 = vmatpush3.msra.mxu1 %v46_v1  ;;  %444 = vmatprep.mubr.msk.f32.mxu1 %vm568_vm0, %v567_v0  ;;  %p516_p5 = por %p515_p4, %p514_p3 }
  0x30   :  { %438 = vmatpush3.msra.mxu0 %v45_v2  ;;  %439 = vmatprep.mubr.msk.f32.mxu0 %vm568_vm0, %v567_v0 }
  0x31   :  { %p517_p6 = pnand %p516_p5, %p510_p2 }
 0x101   :  { %v196_v5 = vpop.f32.mrb[0].mxu1  ;;  %v120_v6 = vpop.f32.mrb[0].mxu0 }
 0x102   :  { %v436_v7 = vpop.f32.mrb[1].mxu1  ;;  %v204_v8 = vsel %vm200_vm2, %v196_v5, -inf  ;;  %v431_v9 = vpop.f32.mrb[1].mxu0  ;;  %v201_v10 = vsel %vm200_vm2, %v120_v6, -inf }
 0x103   :  { %205 = vmax.xlane.f32.xlu0 %v204_v8 }
 0x107   :  { %202 = vmax.xlane.f32.xlu0 %v201_v10 }
 0x190   :  { %v206_v11 = vpop.xlane.xlu0 %205 }
 0x191   :  { %v208_v12 = vsub.f32 %v196_v5, %v206_v11 }
 0x193   :  { %v211_v13 = vmul.f32 1.442695, %v208_v12 }
 0x194   :  { %v203_v14 = vpop.xlane.xlu0 %202 }
 0x195   :  { %457 = vpow2.f32 %v211_v13  ;;  %v207_v15 = vsub.f32 %v120_v6, %v203_v14 }
 0x197   :  { %v209_v16 = vmul.f32 1.442695, %v207_v15 }
 0x199   :  { %459 = vpow2.f32 %v209_v16 }
 0x19f   :  { %v458_v17 = vpop.eup %457 }
 0x1a0   :  { %v216_v18 = vsel %vm200_vm2, %v458_v17, 0.0 }
 0x1a1   :  { %217 = vadd.xlane.f32.xlu1 %v216_v18 }
 0x1a3   :  { %v460_v19 = vpop.eup %459 }
 0x1a4   :  { %v213_v20 = vsel %vm200_vm2, %v460_v19, 0.0 }
 0x1a5   :  { %214 = vadd.xlane.f32.xlu1 %v213_v20 }
 0x22e   :  { %v218_v21 = vpop.xlane.xlu1 %217 }
 0x22f   :  { %461 = vrcp.f32 %v218_v21 }
 0x232   :  { %v215_v22 = vpop.xlane.xlu1 %214 }
 0x233   :  { %463 = vrcp.f32 %v215_v22 }
 0x239   :  { %v462_v23 = vpop.eup %461 }
 0x23a   :  { %v222_v24 = vmul.f32 %v462_v23, %v458_v17 }
 0x23c   :  { %445 = vmatmul.mubr.msk.f32.vlgmr.msra.gmra.mrb[2].mxu1 %vm223_vm3, %v222_v24  ;;  %v370_v27 = vrot.slane %v222_v24, 7 }
 0x23d   :  { %v464_v25 = vpop.eup %463 }
 0x23e   :  { %v221_v26 = vmul.f32 %v464_v25, %v460_v19 }
 0x240   :  { %440 = vmatmul.mubr.msk.f32.vlgmr.msra.gmra.mrb[2].mxu0 %vm223_vm3, %v221_v26  ;;  %v372_v28 = vsel %vm371_vm4, %v370_v27, %v221_v26 }
 0x241   :  { %375 = vst.msk [vmem:[#allocation8] sm:$0x3] %vm374_vm5, %v372_v28 }
 0x242   :  { %520 = shalt.err (!%p517_p6)
}
 0x243   :  { %s521_s16 = scalar_lea.hbm %s652_s3, 32 }
 0x244   :  { %p522_p7 = scmp.ne.s32.totalorder %s652_s3, %s521_s16  ;;  %p525_p8 = scmp.lt.u32.totalorder %s521_s16, %s652_s3 }
 0x246   :  { %p527_p9 = pnand %p525_p8, %p522_p7 }
 0x248   :  { %530 = shalt.err (!%p527_p9)
}
 0x249   :  { %402 = dma.vmem_to_hbm [thread:$0]  %s400_s12, 32, %s652_s3, [#allocation9]   ;;  %vm381_vm6 = vcmask 254976  }
 0x24a   :  { %s570_s23 = smov [#allocation7]  }
 0x24b   :  { %s389_s24 = sshll.u32 %s570_s23, 4  ;;  %s390_s24 = int_to_ptr.vmem [resolvable:$true] %s389_s24 }
 0x24c   :  { %s531_s25 = scalar_lea.vmem %s390_s24, 32  ;;  %p536_p11 = scmp.lt.s32.totalorder %s390_s24, %s390_s24 }
 0x24d   :  { %p532_p10 = scmp.ne.s32.totalorder %s390_s24, %s531_s25  ;;  %p537_p12 = scmp.lt.s32.totalorder %s531_s25, %s531_s25 }
 0x24f   :  { %p538_p13 = por %p537_p12, %p536_p11 }
 0x251   :  { %p539_p0 = pnand %p538_p13, %p532_p10 }
 0x30f   :  { %v366_v29 = vpop.f32.mrb[2].mxu1 }
 0x310   :  { %v446_v30 = vpop.f32.mrb[3].mxu1  ;;  %v378_v31 = vrot.slane %v366_v29, 7 }
 0x313   :  { %v293_v32 = vpop.f32.mrb[2].mxu0 }
 0x314   :  { %v379_v33 = vsel %vm371_vm4, %v378_v31, %v293_v32  ;;  %v441_v34 = vpop.f32.mrb[3].mxu0 }
 0x315   :  { %382 = vst.msk [vmem:[#allocation7] sm:$0x3] %vm381_vm6, %v379_v33 }
 0x316   :  { %542 = shalt.err (!%p539_p0)
}
 0x317   :  { %s543_s27 = scalar_lea.hbm %s651_s2, 32 }
 0x318   :  { %p544_p1 = scmp.ne.s32.totalorder %s651_s2, %s543_s27  ;;  %p547_p2 = scmp.lt.u32.totalorder %s543_s27, %s651_s2 }
 0x31a   :  { %p549_p3 = pnand %p547_p2, %p544_p1 }
 0x31c   :  { %552 = shalt.err (!%p549_p3)
}
 0x31d   :  { %392 = dma.vmem_to_hbm [thread:$0]  %s390_s24, 32, %s651_s2, [#allocation4]  }
 0x31e   :  { %557 = dma.done.wait [#allocation4], 32  }
 0x31f   :  { %558 = vsyncadd [#allocation4], 4294967264 }
 0x320   :  { %559 = dma.done.wait [#allocation9], 32  }
 0x321   :  { %560 = vsyncadd [#allocation9], 4294967264 }
 0x322   :  { %409 = vsyncpa [#allocation3], 1 }
 0x323   :  { %410 = vsyncpa [#allocation6], 1 }
 0x324   :  { %411 = vsyncpa [#allocation4], 1 }
 0x325   :  { %412 = vsyncpa [#allocation9], 1 }

</bundles_post_ra>
